<compile_context>
chip_gen: v6e
topology: v6e:2x2x1
jax: 0.10.0
libtpu: 0.0.40
codegen_flags: <defaults>
</compile_context>

<pallas_src>
import jax
import jax.numpy as jnp
import numpy as np
from jax.experimental import pallas as pl
from jax.experimental.pallas import tpu as pltpu


def gru_question_kernel(tmax_ref, lens_ref, x_ref, wi_ref, wh_ref,
                        bic_ref, bhn_ref, out_ref, xp_ref):
    Bp, Hp = out_ref.shape  # padded batch (multiple of 8), padded hidden (multiple of 128)

    # ---- Prologue: all timesteps' input projections in ONE bf16 MXU GEMM (parallel over T*Bp).
    #      xp = x @ W_i + (b_i + b_h[r|z thirds])
    xp_ref[...] = (
        jnp.dot(x_ref[...], wi_ref[...], preferred_element_type=jnp.float32)
        + bic_ref[...]
    )

    # Hoist loop-invariant operands into vregs once (nothing re-loaded per step except xp_t).
    w_h = wh_ref[...]            # (Hp, 3Hp) bf16
    b_hn = bhn_ref[...]          # (1, Hp)   f32
    lens = lens_ref[...]         # (Bp, 1)   int32 per-row valid length
    t_max = tmax_ref[0]          # scalar: longest valid length in the batch

    def step(t, h):
        # Sublane-aligned, full-tile slice of the precomputed input projections.
        row = pl.multiple_of(t * Bp, Bp)
        xp_t = xp_ref[pl.ds(row, Bp), :]                              # (Bp, 3Hp) f32
        # Single fused hidden->hidden matmul per step (bf16 operands, f32 accumulate).
        hp = jnp.dot(h.astype(jnp.bfloat16), w_h,
                     preferred_element_type=jnp.float32)              # (Bp, 3Hp) f32
        # PyTorch GRU cell, gate order r|z|n; slices land on 128-lane boundaries.
        r = jax.nn.sigmoid(xp_t[:, 0:Hp] + hp[:, 0:Hp])
        z = jax.nn.sigmoid(xp_t[:, Hp:2 * Hp] + hp[:, Hp:2 * Hp])
        n = jnp.tanh(xp_t[:, 2 * Hp:3 * Hp] + r * (hp[:, 2 * Hp:3 * Hp] + b_hn))
        h_new = (1.0 - z) * n + z * h
        # Padded steps keep the previous hidden state -> pack_padded "last valid state".
        return jnp.where(t < lens, h_new, h)

    h0 = jnp.zeros((Bp, Hp), dtype=jnp.float32)
    # Dynamic trip count: skip fully-padded trailing timesteps entirely.
    out_ref[...] = jax.lax.fori_loop(0, t_max, step, h0)


def _round_up(x, m):
    return (x + m - 1) // m * m


def _pad_gates_last(mat, H, Hp):
    """Zero-pad each of the three gate blocks (r|z|n) on the last axis from H to Hp."""
    parts = []
    for g in range(3):
        blk = mat[..., g * H:(g + 1) * H]
        pad = jnp.zeros(mat.shape[:-1] + (Hp - H,), mat.dtype)
        parts.append(jnp.concatenate([blk, pad], axis=-1))
    return jnp.concatenate(parts, axis=-1)


@jax.jit
def question_module_forward(token_ids, emb_table, w_i, w_h, b_i, b_h):
    """token_ids: (B, T) int32; emb_table: (V, E);
    w_i: (E, 3H), w_h: (H, 3H), b_i/b_h: (1, 3H), gate order r|z|n.
    Returns the Seq2Vec GRU encoding (B, H) float32 (eval mode)."""
    B, T = token_ids.shape
    V, E = emb_table.shape
    H = w_h.shape[0]

    # Lane/sublane-dense padded layout.
    Bp = max(8, _round_up(B, 8))
    Hp = max(128, _round_up(H, 128))

    # mask = get_text_field_mask(question): nonzero token ids are real tokens.
    mask = (token_ids != 0)
    lengths = jnp.sum(mask.astype(jnp.int32), axis=1)                       # (B,)
    t_max = jnp.max(lengths).reshape(1).astype(jnp.int32)                   # (1,)
    lens_pad = jnp.zeros((Bp,), jnp.int32).at[:B].set(lengths).reshape(Bp, 1)

    # Word embedding lookup issued directly in time-major order (only the tiny (B,T)
    # id array is transposed, never the activations).
    tok_pad = jnp.zeros((Bp, T), token_ids.dtype).at[:B, :].set(token_ids)   # (Bp, T)
    x = jnp.take(emb_table, jnp.transpose(tok_pad), axis=0)                  # (T, Bp, E)
    x = x.astype(jnp.bfloat16).reshape(T * Bp, E)                            # bf16 MXU operand
    # TODO(synk): at real sizes fuse this gather into the kernel (scalar-prefetch token ids +
    # pl.Element row gather) instead of materializing x through HBM.
    # embedding_dropout / encoder_dropout are identity in eval mode.
    # TODO(synk): training-mode dropout (stochastic masking) intentionally omitted.

    # Gate-padded bf16 MXU weights; r/z thirds of b_h folded into the prologue bias.
    wi_p = _pad_gates_last(w_i, H, Hp).astype(jnp.bfloat16)                  # (E, 3Hp)
    wh_p = _pad_gates_last(w_h, H, Hp)                                       # (H, 3Hp)
    wh_p = jnp.zeros((Hp, 3 * Hp), wh_p.dtype).at[:H, :].set(wh_p).astype(jnp.bfloat16)
    bi_comb = b_i + jnp.concatenate(
        [b_h[:, :2 * H], jnp.zeros((1, H), b_h.dtype)], axis=-1)             # fold b_hr, b_hz
    bic_p = _pad_gates_last(bi_comb, H, Hp).astype(jnp.float32)              # (1, 3Hp)
    bhn_p = jnp.zeros((1, Hp), jnp.float32).at[:, :H].set(b_h[:, 2 * H:])    # (1, Hp)

    out_pad = pl.pallas_call(
        gru_question_kernel,
        out_shape=jax.ShapeDtypeStruct((Bp, Hp), jnp.float32),
        # No grid: all operands are tiny and VMEM-resident; the recurrence is an in-kernel
        # dynamic-length fori_loop, avoiding per-timestep grid/DMA fixed overhead.
        in_specs=[
            pl.BlockSpec(memory_space=pltpu.MemorySpace.SMEM),   # t_max (scalar)
            pl.BlockSpec(memory_space=pltpu.MemorySpace.VMEM),   # per-row lengths
            pl.BlockSpec(memory_space=pltpu.MemorySpace.VMEM),   # x
            pl.BlockSpec(memory_space=pltpu.MemorySpace.VMEM),   # W_i
            pl.BlockSpec(memory_space=pltpu.MemorySpace.VMEM),   # W_h
            pl.BlockSpec(memory_space=pltpu.MemorySpace.VMEM),   # b_i + b_h[r|z]
            pl.BlockSpec(memory_space=pltpu.MemorySpace.VMEM),   # b_hn
        ],
        out_specs=pl.BlockSpec(memory_space=pltpu.MemorySpace.VMEM),
        scratch_shapes=[pltpu.VMEM((T * Bp, 3 * Hp), jnp.float32)],  # precomputed x·W_i + bias
    )(t_max, lens_pad, x, wi_p, wh_p, bic_p, bhn_p)

    return out_pad[:B, :H]


def _reference_forward(token_ids, emb_table, w_i, w_h, b_i, b_h,
                       mxu_dtype=jnp.float32):
    """Pure-JAX reference (lax.scan masked GRU). mxu_dtype=bf16 mirrors the kernel's MXU casts."""
    B, T = token_ids.shape
    H = w_h.shape[0]
    mask = (token_ids != 0).astype(jnp.float32)                              # (B, T)
    emb = jnp.take(emb_table, token_ids, axis=0).astype(jnp.float32)         # (B, T, E)
    x = jnp.transpose(emb, (1, 0, 2))                                        # (T, B, E)
    m = jnp.transpose(mask)[:, :, None]                                      # (T, B, 1)
    wi_c = w_i.astype(mxu_dtype)
    wh_c = w_h.astype(mxu_dtype)

    def step(h, inp):
        x_t, m_t = inp
        gi = jnp.dot(x_t.astype(mxu_dtype), wi_c,
                     preferred_element_type=jnp.float32) + b_i
        gh = jnp.dot(h.astype(mxu_dtype), wh_c,
                     preferred_element_type=jnp.float32) + b_h
        r = jax.nn.sigmoid(gi[:, :H] + gh[:, :H])
        z = jax.nn.sigmoid(gi[:, H:2 * H] + gh[:, H:2 * H])
        n = jnp.tanh(gi[:, 2 * H:] + r * gh[:, 2 * H:])
        h_new = (1.0 - z) * n + z * h
        h = m_t * h_new + (1.0 - m_t) * h
        return h, None

    h0 = jnp.zeros((B, H), jnp.float32)
    h_last, _ = jax.lax.scan(step, h0, (x, m))
    return h_last


if __name__ == "__main__":
    # Small shapes consistent with the module: batch=2, seq=8, vocab=50,
    # embedding dim=32, GRU hidden dim=32.
    B, T, V, E, H = 2, 8, 50, 32, 32
    key = jax.random.PRNGKey(0)
    k_emb, k_tok, k_wih, k_whh, k_bih, k_bhh = jax.random.split(key, 6)

    # word_embeddings: plain normal init (only the encoder gets xavier in __init__).
    emb_table = jax.random.normal(k_emb, (V, E), jnp.float32) * 0.1

    # Token ids with trailing padding (id 0 == pad, as assumed by get_text_field_mask).
    token_ids = jax.random.randint(k_tok, (B, T), 1, V).astype(jnp.int32)
    token_ids = token_ids.at[0, 6:].set(0)   # sequence 0 has length 6
    token_ids = token_ids.at[1, 4:].set(0)   # sequence 1 has length 4

    # Encoder (GRU) weights: xavier_normal_ on the stacked PyTorch (3H,E)/(3H,H) matrices.
    std_ih = np.sqrt(2.0 / (E + 3 * H))
    std_hh = np.sqrt(2.0 / (H + 3 * H))
    w_ih = jax.random.normal(k_wih, (3 * H, E), jnp.float32) * std_ih   # (3H, E)
    w_hh = jax.random.normal(k_whh, (3 * H, H), jnp.float32) * std_hh   # (3H, H)
    # Small non-zero biases so the r/z bias-fold and in-loop n-gate bias paths are exercised.
    b_ih = jax.random.normal(k_bih, (1, 3 * H), jnp.float32) * 0.05
    b_hh = jax.random.normal(k_bhh, (1, 3 * H), jnp.float32) * 0.05

    # Repack so gates r|z|n are stacked along the last axis.
    w_i = jnp.transpose(w_ih)                 # (E, 3H)
    w_h = jnp.transpose(w_hh)                 # (H, 3H)

    out = question_module_forward(token_ids, emb_table, w_i, w_h, b_ih, b_hh)
    out = jax.block_until_ready(out)

    ref_bf16 = _reference_forward(token_ids, emb_table, w_i, w_h, b_ih, b_hh,
                                  mxu_dtype=jnp.bfloat16)
    ref_f32 = _reference_forward(token_ids, emb_table, w_i, w_h, b_ih, b_hh,
                                 mxu_dtype=jnp.float32)
    jax.block_until_ready((ref_bf16, ref_f32))

    assert out.shape == (B, H)
    # Tight check against a reference using the same bf16 MXU casts...
    np.testing.assert_allclose(np.asarray(out), np.asarray(ref_bf16), rtol=2e-3, atol=2e-3)
    # ...and a loose semantics check against the pure-f32 GRU reference.
    np.testing.assert_allclose(np.asarray(out), np.asarray(ref_f32), rtol=5e-2, atol=5e-2)
    print("KERNEL_OK")
</pallas_src>

<mosaic_0001>
module attributes {stable_mosaic.version = 11 : i64} {
  func.func @gru_question_kernel(%arg0: memref<1xi32, #tpu.memory_space<smem>>, %arg1: memref<8x1xi32, #tpu.memory_space<vmem>>, %arg2: memref<64x32xbf16, #tpu.memory_space<vmem>>, %arg3: memref<32x384xbf16, #tpu.memory_space<vmem>>, %arg4: memref<128x384xbf16, #tpu.memory_space<vmem>>, %arg5: memref<1x384xf32, #tpu.memory_space<vmem>>, %arg6: memref<1x128xf32, #tpu.memory_space<vmem>>, %arg7: memref<8x128xf32, #tpu.memory_space<vmem>>, %arg8: memref<64x384xf32, #tpu.memory_space<vmem>>) attributes {dimension_semantics = [], scalar_prefetch = 0 : i64, scratch_operands = 1 : i64, tpu.core_type = #tpu.core_type<tc>} {
    %c0 = arith.constant 0 : index
    %c0_0 = arith.constant 0 : index
    %0 = vector.load %arg2[%c0, %c0_0] : memref<64x32xbf16, #tpu.memory_space<vmem>>, vector<64x32xbf16>
    %c0_1 = arith.constant 0 : index
    %c0_2 = arith.constant 0 : index
    %1 = vector.load %arg3[%c0_1, %c0_2] : memref<32x384xbf16, #tpu.memory_space<vmem>>, vector<32x384xbf16>
    %cst = arith.constant dense<0.000000e+00> : vector<64x384xf32>
    %2 = tpu.matmul %0, %1, %cst {dimension_numbers = #tpu.dot_dimension_numbers<[1], [0], [0], [1], [0, 0, 1, 1], [], []>} : vector<64x32xbf16>, vector<32x384xbf16>, vector<64x384xf32> -> vector<64x384xf32>
    %c0_3 = arith.constant 0 : index
    %c0_4 = arith.constant 0 : index
    %3 = vector.load %arg5[%c0_3, %c0_4] : memref<1x384xf32, #tpu.memory_space<vmem>>, vector<1x384xf32>
    %4 = vector.broadcast %3 : vector<1x384xf32> to vector<64x384xf32>
    %5 = arith.addf %2, %4 : vector<64x384xf32>
    %c0_5 = arith.constant 0 : index
    %c0_6 = arith.constant 0 : index
    %6 = vector.load %arg8[%c0_5, %c0_6] : memref<64x384xf32, #tpu.memory_space<vmem>>, vector<64x384xf32>
    tpu.vector_store %arg8[%c0_5, %c0_6], %5 {strides = array<i32>} : memref<64x384xf32, #tpu.memory_space<vmem>>, vector<64x384xf32>,
    %c0_7 = arith.constant 0 : index
    %c0_8 = arith.constant 0 : index
    %7 = vector.load %arg4[%c0_7, %c0_8] : memref<128x384xbf16, #tpu.memory_space<vmem>>, vector<128x384xbf16>
    %c0_9 = arith.constant 0 : index
    %c0_10 = arith.constant 0 : index
    %8 = vector.load %arg6[%c0_9, %c0_10] : memref<1x128xf32, #tpu.memory_space<vmem>>, vector<1x128xf32>
    %c0_11 = arith.constant 0 : index
    %c0_12 = arith.constant 0 : index
    %9 = vector.load %arg1[%c0_11, %c0_12] : memref<8x1xi32, #tpu.memory_space<vmem>>, vector<8x1xi32>
    %c0_13 = arith.constant 0 : index
    %10 = memref.load %arg0[%c0_13] : memref<1xi32, #tpu.memory_space<smem>>
    %cst_14 = arith.constant 0.000000e+00 : f32
    %11 = vector.broadcast %cst_14 : f32 to vector<8x128xf32>
    %c0_i32 = arith.constant 0 : i32
    %12 = arith.subi %10, %c0_i32 : i32
    %13 = arith.addi %c0_i32, %12 : i32
    %c1_i32 = arith.constant 1 : i32
    %14 = scf.for %arg9 = %c0_i32 to %13 step %c1_i32 iter_args(%arg10 = %11) -> (vector<8x128xf32>)  : i32 {
      %c8_i32 = arith.constant 8 : i32
      %16 = arith.muli %arg9, %c8_i32 : i32
      %17 = tpu.assume_multiple %16, 8 : i32
      %18 = arith.index_cast %17 : i32 to index
      %c0_17 = arith.constant 0 : index
      %19 = vector.load %arg8[%18, %c0_17] : memref<64x384xf32, #tpu.memory_space<vmem>>, vector<8x384xf32>
      %20 = arith.truncf %arg10 : vector<8x128xf32> to vector<8x128xbf16>
      %cst_18 = arith.constant dense<0.000000e+00> : vector<8x384xf32>
      %21 = tpu.matmul %20, %7, %cst_18 {dimension_numbers = #tpu.dot_dimension_numbers<[1], [0], [0], [1], [0, 0, 1, 1], [], []>} : vector<8x128xbf16>, vector<128x384xbf16>, vector<8x384xf32> -> vector<8x384xf32>
      %22 = vector.extract_strided_slice %19 {offsets = [0, 0], sizes = [8, 128], strides = [1, 1]} : vector<8x384xf32> to vector<8x128xf32>
      %23 = vector.extract_strided_slice %21 {offsets = [0, 0], sizes = [8, 128], strides = [1, 1]} : vector<8x384xf32> to vector<8x128xf32>
      %24 = arith.addf %22, %23 : vector<8x128xf32>
      %25 = arith.negf %24 : vector<8x128xf32>
      %26 = math.exp %25 : vector<8x128xf32>
      %cst_19 = arith.constant 1.000000e+00 : f32
      %27 = vector.broadcast %cst_19 : f32 to vector<8x128xf32>
      %28 = arith.addf %27, %26 : vector<8x128xf32>
      %29 = arith.divf %27, %28 : vector<8x128xf32>
      %30 = vector.extract_strided_slice %19 {offsets = [0, 128], sizes = [8, 128], strides = [1, 1]} : vector<8x384xf32> to vector<8x128xf32>
      %31 = vector.extract_strided_slice %21 {offsets = [0, 128], sizes = [8, 128], strides = [1, 1]} : vector<8x384xf32> to vector<8x128xf32>
      %32 = arith.addf %30, %31 : vector<8x128xf32>
      %33 = arith.negf %32 : vector<8x128xf32>
      %34 = math.exp %33 : vector<8x128xf32>
      %cst_20 = arith.constant 1.000000e+00 : f32
      %35 = vector.broadcast %cst_20 : f32 to vector<8x128xf32>
      %36 = arith.addf %35, %34 : vector<8x128xf32>
      %37 = arith.divf %35, %36 : vector<8x128xf32>
      %38 = vector.extract_strided_slice %19 {offsets = [0, 256], sizes = [8, 128], strides = [1, 1]} : vector<8x384xf32> to vector<8x128xf32>
      %39 = vector.extract_strided_slice %21 {offsets = [0, 256], sizes = [8, 128], strides = [1, 1]} : vector<8x384xf32> to vector<8x128xf32>
      %40 = vector.broadcast %8 : vector<1x128xf32> to vector<8x128xf32>
      %41 = arith.addf %39, %40 : vector<8x128xf32>
      %42 = arith.mulf %29, %41 : vector<8x128xf32>
      %43 = arith.addf %38, %42 : vector<8x128xf32>
      %44 = math.tanh %43 : vector<8x128xf32>
      %cst_21 = arith.constant 1.000000e+00 : f32
      %45 = vector.broadcast %cst_21 : f32 to vector<8x128xf32>
      %46 = arith.subf %45, %37 : vector<8x128xf32>
      %47 = arith.mulf %46, %44 : vector<8x128xf32>
      %48 = arith.mulf %37, %arg10 : vector<8x128xf32>
      %49 = arith.addf %47, %48 : vector<8x128xf32>
      %50 = vector.broadcast %arg9 : i32 to vector<8x1xi32>
      %51 = arith.cmpi slt, %50, %9 : vector<8x1xi32>
      %52 = vector.shape_cast %51 : vector<8x1xi1> to vector<8x1xi1>
      %53 = vector.broadcast %52 : vector<8x1xi1> to vector<8x128xi1>
      %54 = arith.select %53, %49, %arg10 : vector<8x128xi1>, vector<8x128xf32>
      scf.yield %54 : vector<8x128xf32>
    }
    %c0_15 = arith.constant 0 : index
    %c0_16 = arith.constant 0 : index
    %15 = vector.load %arg7[%c0_15, %c0_16] : memref<8x128xf32, #tpu.memory_space<vmem>>, vector<8x128xf32>
    tpu.vector_store %arg7[%c0_15, %c0_16], %14 {strides = array<i32>} : memref<8x128xf32, #tpu.memory_space<vmem>>, vector<8x128xf32>,
    return
  }
}

</mosaic_0001>

<bundles_post_ra>
// kernel: question_module_forward.1
= control target key start
LH: loop header
LB: loop body
LE: loop exit
PB: predicated region body
PF: predicated region fallthrough
CT: control target
= control target key end

     0   :  { %v775_v1 = vmov 0   ;;  %vm113_vm0 = vcmask 261120   ;;  %v46_v45 = vlaneseq  ;;  %s1135_s0 = inlined_call_operand.<no memory space> [shape: s32[1], index: 0, kind: input, shape index: {}]   ;;  %s1136_s3 = inlined_call_operand.vmem [shape: bf16[32,384], index: 3, kind: input, shape index: {}]   ;;  %s1137_s7 = inlined_call_operand.vmem [shape: f32[8,128], index: 7, kind: output, shape index: {}]   ;;  %s1138_s2 = inlined_call_operand.vmem [shape: bf16[64,32], index: 2, kind: input, shape index: {}]   ;;  %s1139_s4 = inlined_call_operand.vmem [shape: bf16[128,384], index: 4, kind: input, shape index: {}]   ;;  %s1140_s6 = inlined_call_operand.vmem [shape: f32[1,128], index: 6, kind: input, shape index: {}]   ;;  %s1141_s1 = inlined_call_operand.vmem [shape: s32[8,1], index: 1, kind: input, shape index: {}]   ;;  %s1142_s5 = inlined_call_operand.vmem [shape: f32[1,384], index: 5, kind: input, shape index: {}]  }
   0x1   :  { %v728_v0 = vld [vmem:[%s1136_s3 + $0x1c] ss:$12 sps:$4 sm:$0xff]   ;;  %158 = vmatprep.mubr.bf16.mxu0 %v775_v1  ;;  %188 = vmatprep.mubr.bf16.mxu1 %v775_v1  ;;  %v730_v2 = vld [vmem:[%s1136_s3 + $0x18] ss:$12 sps:$4 sm:$0xff]   ;;  %v733_v4 = vld [vmem:[%s1136_s3] ss:$12 sps:$4 sm:$0xff]  }
   0x2   :  { %138 = vmatprep.subr.bf16.mxu0 %v728_v0  ;;  %696 = vmatprep.subr.bf16.mxu1 %v728_v0  ;;  %v731_v3 = vld [vmem:[%s1136_s3 + $0x4] ss:$12 sps:$4 sm:$0xff]   ;;  %v736_v6 = vld [vmem:[%s1136_s3 + $0x20] ss:$12 sps:$4 sm:$0xff]   ;;  %v735_v7 = vld [vmem:[%s1138_s2 + $0x18] sm:$0xff]   ;;  %v47_v46 = vshrl.u32 %v46_v45, 7 }
   0x3   :  { %139 = vmatpush1.bf16.msra.mxu0 %v730_v2  ;;  %698 = vmatpush1.bf16.msra.mxu1 %v730_v2  ;;  %v734_v5 = vld [vmem:[%s1138_s2] sm:$0xff]   ;;  %v737_v8 = vld [vmem:[%s1136_s3 + $0x8] ss:$12 sps:$4 sm:$0xff]   ;;  %v870_v13 = vld [vmem:[%s1139_s4 + $0xc] sm:$0xff]  ;;  %p618_p0 = scmp.le.s32.totalorder %s1135_s0, 0 }
   0x4   :  { %140 = vmatprep.subr.bf16.mxu0 %v731_v3  ;;  %697 = vmatprep.subr.bf16.mxu1 %v731_v3  ;;  %v738_v9 = vld [vmem:[%s1138_s2 + $0x8] sm:$0xff]   ;;  %v739_v10 = vld [vmem:[%s1138_s2 + $0x10] sm:$0xff]   ;;  %v860_v11 = vld [vmem:[%s1139_s4] sm:$0xff]  ;;  %v48_v47 = vsub.s32 0, %v47_v46  ;;  %v52_v49 = vsub.s32 1, %v47_v46  ;;  %v56_v56 = vsub.s32 2, %v47_v46 }
   0x5   :  { %v865_v12 = vld [vmem:[%s1139_s4 + $0x8] sm:$0xf]  ;;  %v875_v14 = vld [vmem:[%s1139_s4 + $0x14] sm:$0xf]  ;;  %v880_v15 = vld [vmem:[%s1139_s4 + $0x18] sm:$0xff] }
   0x6   :  { %v885_v16 = vld [vmem:[%s1139_s4 + $0x20] sm:$0xf]  ;;  %v890_v17 = vld [vmem:[%s1139_s4 + $0x24] sm:$0xff]  ;;  %v895_v18 = vld [vmem:[%s1139_s4 + $0x2c] sm:$0xf] }
   0x7   :  { %141 = vmatpush1.bf16.msra.mxu0 %v733_v4  ;;  %699 = vmatpush1.bf16.msra.mxu1 %v733_v4  ;;  %v900_v19 = vld [vmem:[%s1139_s4 + $0x30] sm:$0xff]  ;;  %v905_v20 = vld [vmem:[%s1139_s4 + $0x38] sm:$0xf]  ;;  %v910_v21 = vld [vmem:[%s1139_s4 + $0x3c] sm:$0xff] }
   0x8   :  { %664 = vmatprep.subr.bf16.mxu1 %v736_v6  ;;  %v915_v22 = vld [vmem:[%s1139_s4 + $0x44] sm:$0xf]  ;;  %v920_v23 = vld [vmem:[%s1139_s4 + $0x48] sm:$0xff]  ;;  %v925_v24 = vld [vmem:[%s1139_s4 + $0x50] sm:$0xf] }
   0x9   :  { %v930_v25 = vld [vmem:[%s1139_s4 + $0x54] sm:$0xff]  ;;  %v935_v26 = vld [vmem:[%s1139_s4 + $0x5c] sm:$0xf]  ;;  %v940_v27 = vld [vmem:[%s1139_s4 + $0x60] sm:$0xff] }
   0xa   :  { %610 = vmatmul.mubr.msk.bf16.vlgmr.msra.gmra.mxu0 %vm113_vm0, %v734_v5  ;;  %613 = vmatmul.mubr.msk.bf16.vlgmr.msra.gmra.mxu1 %vm113_vm0, %v735_v7  ;;  %v945_v28 = vld [vmem:[%s1139_s4 + $0x68] sm:$0xf]  ;;  %v950_v29 = vld [vmem:[%s1139_s4 + $0x6c] sm:$0xff]  ;;  %v955_v30 = vld [vmem:[%s1139_s4 + $0x74] sm:$0xf] }
   0xb   :  { %665 = vmatpush3.bf16.msra.mxu1 %v736_v6  ;;  %168 = vmatprep.mubr.bf16.mxu0 %v775_v1  ;;  %v960_v31 = vld [vmem:[%s1139_s4 + $0x78] sm:$0xff]  ;;  %v965_v32 = vld [vmem:[%s1139_s4 + $0x80] sm:$0xf]  ;;  %v970_v33 = vld [vmem:[%s1139_s4 + $0x84] sm:$0xff] }
   0xc   :  { %666 = vmatprep.subr.bf16.mxu1 %v737_v8  ;;  %668 = vmatprep.mubr.msk.bf16.mxu1 %vm113_vm0, %v734_v5  ;;  %v975_v34 = vld [vmem:[%s1139_s4 + $0x8c] sm:$0xf]  ;;  %v980_v35 = vld [vmem:[%s1139_s4 + $0x90] sm:$0xff]  ;;  %v985_v36 = vld [vmem:[%s1139_s4 + $0x98] sm:$0xf] }
   0xd   :  { %v990_v37 = vld [vmem:[%s1139_s4 + $0x9c] sm:$0xff]  ;;  %v995_v38 = vld [vmem:[%s1139_s4 + $0xa4] sm:$0xf]  ;;  %v1000_v39 = vld [vmem:[%s1139_s4 + $0xa8] sm:$0xff] }
   0xe   :  { %v1005_v40 = vld [vmem:[%s1139_s4 + $0xb0] sm:$0xf]  ;;  %v1010_v41 = vld [vmem:[%s1139_s4 + $0xb4] sm:$0xff]  ;;  %v1015_v42 = vld [vmem:[%s1139_s4 + $0xbc] sm:$0xf] }
   0xf   :  { %667 = vmatpush3.bf16.msra.mxu1 %v737_v8  ;;  %v1020_v43 = vld [vmem:[%s1140_s6] ss:$0 sm:$0xff] }
  0x10   :  { %v1025_v44 = vld [vmem:[%s1141_s1] sm:$0xff] }
  0x11   :  { %v44_v48 = vld [vmem:[%s1142_s5] sm:$0x7]  ;;  %s1057_s5 = smov (!%p618_p0), 0  }
  0x12   :  { %611 = vmatmul.mubr.msk.bf16.gmra.mxu0 %vm113_vm0, %v738_v9  ;;  %669 = vmatmul.mubr.msk.bf16.vlgmr.msra.gmra.mxu1 %vm113_vm0, %v738_v9  ;;  %v1030_v50 = vrot.slane %v44_v48, %v48_v47  ;;  %v1032_v51 = vrot.slane %v44_v48, %v52_v49 }
  0x13   :  { %178 = vmatprep.mubr.bf16.mxu0 %v775_v1  ;;  %672 = vmatprep.mubr.msk.bf16.mxu1 %vm113_vm0, %v739_v10  ;;  %v57_v1 = vrot.slane %v44_v48, %v56_v56 }
  0x1a   :  { %612 = vmatmul.mubr.msk.bf16.gmra.mxu0 %vm113_vm0, %v739_v10  ;;  %673 = vmatmul.mubr.msk.bf16.gmra.mxu1 %vm113_vm0, %v735_v7 }
  0xca   :  { %v160_v52 = vpop.f32.mrf.mxu0  ;;  %v190_v53 = vpop.f32.mrf.mxu1 }
  0xcb   :  { %v161_v54 = vadd.f32 %v160_v52, %v1030_v50  ;;  %v191_v55 = vadd.f32 %v190_v53, %v1030_v50 }
  0xcc   :  { %v162_v57 = vpop.f32.mrf.mxu0  ;;  %v192_v58 = vpop.f32.mrf.mxu1 }
  0xcd   :  { %264 = vst [vmem:[#allocation2] sm:$0xff] %v161_v54  ;;  %282 = vst [vmem:[#allocation2 + $0x90] sm:$0xff] %v191_v55  ;;  %v163_v59 = vadd.f32 %v162_v57, %v1032_v51  ;;  %v193_v60 = vadd.f32 %v192_v58, %v1032_v51 }
  0xce   :  { %v164_v61 = vpop.f32.mrf.mxu0  ;;  %v194_v62 = vpop.f32.mrf.mxu1 }
  0xcf   :  { %265 = vst [vmem:[#allocation2 + $0x8] sm:$0xff] %v163_v59  ;;  %283 = vst [vmem:[#allocation2 + $0x98] sm:$0xff] %v193_v60  ;;  %v165_v63 = vadd.f32 %v164_v61, %v1030_v50  ;;  %v195_v0 = vadd.f32 %v194_v62, %v1030_v50 }
  0xd0   :  { %v166_v2 = vpop.f32.mrf.mxu0  ;;  %v196_v3 = vpop.f32.mrf.mxu1 }
  0xd1   :  { %267 = vst [vmem:[#allocation2 + $0x18] sm:$0xff] %v165_v63  ;;  %285 = vst [vmem:[#allocation2 + $0xa8] sm:$0xff] %v195_v0  ;;  %v167_v4 = vadd.f32 %v166_v2, %v1032_v51  ;;  %v197_v5 = vadd.f32 %v196_v3, %v1032_v51 }
  0xd2   :  { %v170_v6 = vpop.f32.mrf.mxu0  ;;  %v670_v7 = vpop.f32.mrf.mxu1 }
  0xd3   :  { %268 = vst [vmem:[#allocation2 + $0x20] sm:$0xff] %v167_v4  ;;  %286 = vst [vmem:[#allocation2 + $0xb0] sm:$0xff] %v197_v5  ;;  %v171_v8 = vadd.f32 %v170_v6, %v1030_v50  ;;  %v242_v9 = vadd.f32 %v670_v7, %v57_v1 }
  0xd4   :  { %v172_v10 = vpop.f32.mrf.mxu0  ;;  %v233_v45 = vpop.f32.mrf.mxu1 }
  0xd5   :  { %270 = vst [vmem:[#allocation2 + $0x30] sm:$0xff] %v171_v8  ;;  %272 = vst [vmem:[#allocation2 + $0x40] sm:$0xff] %v242_v9  ;;  %v173_v46 = vadd.f32 %v172_v10, %v1032_v51  ;;  %v234_v47 = vadd.f32 %v233_v45, %v57_v1  ;;  %v1053_v45 = vmov 0.0  }
  0xd6   :  { %v174_v48 = vpop.f32.mrf.mxu0  ;;  %v671_v49 = vpop.f32.mrf.mxu1 }
  0xd7   :  { %271 = vst [vmem:[#allocation2 + $0x38] sm:$0xff] %v173_v46  ;;  %266 = vst [vmem:[#allocation2 + $0x10] sm:$0xff] %v234_v47  ;;  %v175_v52 = vadd.f32 %v174_v48, %v1030_v50  ;;  %v245_v53 = vadd.f32 %v671_v49, %v57_v1 }
  0xd8   :  { %v176_v54 = vpop.f32.mrf.mxu0  ;;  %v236_v55 = vpop.f32.mrf.mxu1 }
  0xd9   :  { %273 = vst [vmem:[#allocation2 + $0x48] sm:$0xff] %v175_v52  ;;  %275 = vst [vmem:[#allocation2 + $0x58] sm:$0xff] %v245_v53  ;;  %v177_v56 = vadd.f32 %v176_v54, %v1032_v51  ;;  %v237_v57 = vadd.f32 %v236_v55, %v57_v1 }
  0xda   :  { %v180_v58 = vpop.f32.mrf.mxu0  ;;  %v674_v59 = vpop.f32.mrf.mxu1 }
  0xdb   :  { %274 = vst [vmem:[#allocation2 + $0x50] sm:$0xff] %v177_v56  ;;  %269 = vst [vmem:[#allocation2 + $0x28] sm:$0xff] %v237_v57  ;;  %v181_v60 = vadd.f32 %v180_v58, %v1030_v50  ;;  %v258_v61 = vadd.f32 %v674_v59, %v57_v1 }
  0xdc   :  { %v182_v62 = vpop.f32.mrf.mxu0  ;;  %v249_v63 = vpop.f32.mrf.mxu1 }
  0xdd   :  { %276 = vst [vmem:[#allocation2 + $0x60] sm:$0xff] %v181_v60  ;;  %284 = vst [vmem:[#allocation2 + $0xa0] sm:$0xff] %v258_v61  ;;  %v183_v0 = vadd.f32 %v182_v62, %v1032_v51  ;;  %v250_v2 = vadd.f32 %v249_v63, %v57_v1 }
  0xde   :  { %v184_v3 = vpop.f32.mrf.mxu0  ;;  %v675_v4 = vpop.f32.mrf.mxu1 }
  0xdf   :  { %277 = vst [vmem:[#allocation2 + $0x68] sm:$0xff] %v183_v0  ;;  %278 = vst [vmem:[#allocation2 + $0x70] sm:$0xff] %v250_v2  ;;  %v185_v5 = vadd.f32 %v184_v3, %v1030_v50  ;;  %v261_v6 = vadd.f32 %v675_v4, %v57_v1  ;;  %595 = sbr.rel (%p618_p0) target bundleno = 514 (0x202), region = 50 }
  0xe0   :  { %v186_v7 = vpop.f32.mrf.mxu0  ;;  %v252_v8 = vpop.f32.mrf.mxu1 }
  0xe1   :  { %279 = vst [vmem:[#allocation2 + $0x78] sm:$0xff] %v185_v5  ;;  %287 = vst [vmem:[#allocation2 + $0xb8] sm:$0xff] %v261_v6  ;;  %v187_v9 = vadd.f32 %v186_v7, %v1032_v51  ;;  %v253_v10 = vadd.f32 %v252_v8, %v57_v1 }
  0xe3   :  { %280 = vst [vmem:[#allocation2 + $0x80] sm:$0xff] %v187_v9  ;;  %281 = vst [vmem:[#allocation2 + $0x88] sm:$0xff] %v253_v10 }
  0xe4   :  { %v1055_v46 = vmov 0.0  }
  0xe5 LB: > { %v643_v50 = vcombine.high %v1000_v39, %v1010_v41  ;;  %v642_v51 = vcombine.low %v1000_v39, %v1010_v41  ;;  %v640_v1 = vcombine.high %v980_v35, %v990_v37  ;;  %v639_v47 = vcombine.low %v980_v35, %v990_v37  ;;  %s619_s6 = sshll.u32 %s769_s5, 3  ;;  %s769_s5 = sphi %s1057_s5, %s326_s5   ;;  %v765_v46 = vphi %v1055_v46, %v1143_v46  }
  0xe6   : > { %v644_v48 = vcombine.low %v1005_v40, %v1015_v42  ;;  %v637_v49 = vcombine.high %v960_v31, %v970_v33  ;;  %v776_v52 = vmov 0.0   ;;  %v777_v53 = vmov 0   ;;  %s331_s16 = sshra.s32 %s619_s6, 3 }
  0xe7   : > { %468 = vmatprep.subr.bf16.mxu0 %v643_v50  ;;  %676 = vmatprep.subr.bf16.mxu1 %v776_v52  ;;  %v641_v54 = vcombine.low %v985_v36, %v995_v38  ;;  %v636_v55 = vcombine.low %v960_v31, %v970_v33  ;;  %v577_v56 = vstv %s769_s5  ;;  %v634_v57 = vcombine.high %v940_v27, %v950_v29  ;;  %s648_s17 = smul.u32 24, %s331_s16  ;;  %s326_s5 = sadd.s32 1, %s769_s5  }
  0xe8   : > { %469 = vmatpush1.bf16.msra.mxu0 %v642_v51  ;;  %677 = vmatpush3.bf16.msra.mxu1 %v644_v48  ;;  %vm778_vm1 = vmmov 0   ;;  %vm578_vm2 = vcmp.lt.s32.totalorder %v577_v56, %v1025_v44  ;;  %v638_v58 = vcombine.low %v965_v32, %v975_v34  ;;  %v633_v60 = vcombine.low %v940_v27, %v950_v29  ;;  %p325_p1 = scmp.ge.s32.totalorder %s326_s5, %s1135_s0 }
  0xe9   : > { %470 = vmatprep.subr.bf16.mxu0 %v640_v1  ;;  %500 = vmatprep.mubr.bf16.mxu0 %v777_v53  ;;  %v579_v59 = vsel %vm578_vm2, 1, %v777_v53  ;;  %v631_v61 = vcombine.high %v920_v23, %v930_v25  ;;  %v635_v62 = vcombine.low %v945_v28, %v955_v30  ;;  %v630_v63 = vcombine.low %v920_v23, %v930_v25  ;;  %s335_s18 = scalar_lea.vmem [#allocation2], %s648_s17 }
  0xea   : > { %678 = vmatprep.subr.bf16.mxu1 %v776_v52  ;;  %740 = vset.pattern.permute.xlu0 %v777_v53  ;;  %v628_v0 = vcombine.high %v900_v19, %v910_v21  ;;  %v632_v2 = vcombine.low %v925_v24, %v935_v26  ;;  %v627_v3 = vcombine.low %v900_v19, %v910_v21  ;;  %v336_v50 = vld [vmem:[%s335_s18] sm:$0xff]  ;;  %v337_v53 = vld [vmem:[%s335_s18 + $0x8] sm:$0xff] }
  0xeb   : > { %692 = vmatprep.mubr.msk.bf16.mxu1 %vm778_vm1, %v776_v52  ;;  %581 = vperm.xlu0 %740, %v579_v59   ;;  %v625_v4 = vcombine.high %v880_v15, %v890_v17  ;;  %v629_v5 = vcombine.low %v905_v20, %v915_v22  ;;  %v624_v6 = vcombine.low %v880_v15, %v890_v17 }
  0xec   : > { %471 = vmatpush1.bf16.msra.mxu0 %v639_v47  ;;  %679 = vmatpush3.bf16.msra.mxu1 %v641_v54  ;;  %v622_v7 = vcombine.high %v860_v11, %v870_v13  ;;  %v626_v8 = vcombine.low %v885_v16, %v895_v18  ;;  %v621_v9 = vcombine.low %v860_v11, %v870_v13 }
  0xed   : > { %472 = vmatprep.subr.bf16.mxu0 %v637_v49  ;;  %680 = vmatprep.subr.bf16.mxu1 %v776_v52  ;;  %v623_v10 = vcombine.low %v865_v12, %v875_v14  ;;  %v339_v45 = vpack.c.bf16 %v765_v46, %v765_v46 }
  0xf0   : > { %473 = vmatpush1.bf16.msra.mxu0 %v636_v55  ;;  %681 = vmatpush3.bf16.msra.mxu1 %v638_v58 }
  0xf1   : > { %474 = vmatprep.subr.bf16.mxu0 %v634_v57  ;;  %682 = vmatprep.subr.bf16.mxu1 %v776_v52 }
  0xf4   : > { %475 = vmatpush1.bf16.msra.mxu0 %v633_v60  ;;  %683 = vmatpush3.bf16.msra.mxu1 %v635_v62 }
  0xf5   : > { %476 = vmatprep.subr.bf16.mxu0 %v631_v61  ;;  %684 = vmatprep.subr.bf16.mxu1 %v776_v52 }
  0xf8   : > { %477 = vmatpush1.bf16.msra.mxu0 %v630_v63  ;;  %685 = vmatpush3.bf16.msra.mxu1 %v632_v2 }
  0xf9   : > { %478 = vmatprep.subr.bf16.mxu0 %v628_v0  ;;  %686 = vmatprep.subr.bf16.mxu1 %v776_v52 }
  0xfc   : > { %479 = vmatpush1.bf16.msra.mxu0 %v627_v3  ;;  %687 = vmatpush3.bf16.msra.mxu1 %v629_v5  ;;  %v338_v3 = vld [vmem:[%s335_s18 + $0x10] sm:$0xff] }
  0xfd   : > { %480 = vmatprep.subr.bf16.mxu0 %v625_v4  ;;  %688 = vmatprep.subr.bf16.mxu1 %v776_v52 }
 0x100   : > { %481 = vmatpush1.bf16.msra.mxu0 %v624_v6  ;;  %689 = vmatpush3.bf16.msra.mxu1 %v626_v8 }
 0x101   : > { %482 = vmatprep.subr.bf16.mxu0 %v622_v7  ;;  %690 = vmatprep.subr.bf16.mxu1 %v776_v52 }
 0x104   : > { %483 = vmatpush1.bf16.msra.mxu0 %v621_v9  ;;  %691 = vmatpush3.bf16.msra.mxu1 %v623_v10 }
 0x107   : > { %501 = vmatmul.mubr.bf16.vlgmr.msra.gmra.mxu0 %v339_v45  ;;  %693 = vmatmul.mubr.bf16.vlgmr.msra.gmra.mxu1 %v339_v45 }
 0x166   : > { %v582_v7 = vpop.permute.xlu0 %581 }
 0x167   : > { %vm583_vm3 = vcmp.eq.s32.totalorder %v582_v7, 1 }
 0x1c7   : > { %v502_v51 = vpop.f32.mrf.mxu0  ;;  %v543_v48 = vpop.f32.mrf.mxu1 }
 0x1c8   : > { %v549_v1 = vadd.f32 %v502_v51, %v336_v50  ;;  %v569_v0 = vadd.f32 %v1020_v43, %v543_v48 }
 0x1c9   : > { %v504_v47 = vpop.f32.mrf.mxu0  ;;  %v694_v55 = vpop.f32.mrf.mxu1 }
 0x1ca   : > { %v645_v49 = vmul.f32 -1.442695, %v549_v1  ;;  %v556_v57 = vadd.f32 %v504_v47, %v337_v53 }
 0x1cb   : > { %v506_v54 = vpop.f32.mrf.mxu0  ;;  %v546_v52 = vpop.f32.mrf.mxu1 }
 0x1cc   : > { %741 = vpow2.f32 %v645_v49  ;;  %v646_v59 = vmul.f32 -1.442695, %v556_v57 }
 0x1cd   : > { %v507_v56 = vpop.f32.mrf.mxu0  ;;  %v695_v58 = vpop.f32.mrf.mxu1 }
 0x1ce   : > { %743 = vpow2.f32 %v646_v59 }
 0x1d9   : > { %v742_v60 = vpop.eup %741 }
 0x1da   : > { %v553_v61 = vadd.f32 1.0, %v742_v60 }
 0x1db   : > { %v744_v62 = vpop.eup %743 }
 0x1dc   : > { %745 = vrcp.f32 %v553_v61  ;;  %v560_v63 = vadd.f32 1.0, %v744_v62 }
 0x1de   : > { %747 = vrcp.f32 %v560_v63 }
 0x1e9   : > { %v746_v2 = vpop.eup %745 }
 0x1ea   : > { %v570_v4 = vmul.f32 %v746_v2, %v569_v0 }
 0x1eb   : > { %v748_v6 = vpop.eup %747 }
 0x1ec   : > { %v571_v5 = vadd.f32 %v570_v4, %v338_v3  ;;  %v573_v8 = vsub.f32 1.0, %v748_v6  ;;  %v575_v45 = vmul.f32 %v765_v46, %v748_v6 }
 0x1ee   : > { %749 = vtanh.f32 %v571_v5 }
 0x1fb   : > { %v750_v9 = vpop.eup %749 }
 0x1fc   : > { %v574_v10 = vmul.f32 %v750_v9, %v573_v8 }
 0x1fd   :  { %328 = sbr.rel (!%p325_p1) target bundleno = 229 (0xe5), region = 56 }
 0x1fe   : > { %v576_v50 = vadd.f32 %v575_v45, %v574_v10 }
 0x200   : > { %v584_v51 = vsel %vm583_vm3, %v576_v50, %v765_v46  }
 0x201   : > { %v1143_v46 = vmov %v584_v51  ;;  %v1144_v45 = vmov (%p325_p1), %v584_v51 }
 0x202 PF:  { %585 = vst [vmem:[%s1137_s7] sm:$0xff] %v773_v45  ;;  %v773_v45 = vphi %v1053_v45, %v1144_v45  }

</bundles_post_ra>
